<compile_context>
chip_gen: v5e
topology: v5e:2x2
jax: 0.10.0
libtpu: 0.0.40
codegen_flags: <defaults>
</compile_context>

<pallas_src>
import functools
import math

import jax
import jax.numpy as jnp
from jax.experimental import pallas as pl
from jax.experimental.pallas import tpu as pltpu


def _round_up(n, m):
    return ((n + m - 1) // m) * m


def _pick_tile(n, preferred):
    """Largest sublane-friendly tile <= preferred that evenly divides n."""
    for t in (preferred, 1024, 512, 256, 128, 64, 32, 16, 8):
        if t <= n and n % t == 0:
            return t
    return n


def _pick_lane_tile(n, preferred):
    """Key-axis tile: multiple of 128 (lane-dense) or the full extent."""
    for t in (preferred, 1024, 512, 384, 256, 128):
        if t <= n and n % t == 0:
            return t
    return n


# ---------------------------------------------------------------------------
# Fused projection + flash-attention kernel.
# Blocks: x_q (1, tq, E), x_k (1, tk, E), wq (E, Dp), wkv (E, 2*Dp),
#         bq (1, Dp), bkv (1, 2*Dp), bias (1, 1, S), out (1, tq, Dp)
# Scratch: q (tq, Dp) dot_dtype, m/l (tq, 1) f32, acc (tq, Dp) f32
# ---------------------------------------------------------------------------
def _fused_attn_kernel(vis_ref,                       # scalar prefetch (SMEM)
                       xq_ref, xk_ref,                # x: q-row view / k-row view
                       wq_ref, wkv_ref,               # (E, Dp), (E, 2*Dp)
                       bq_ref, bkv_ref,               # (1, Dp), (1, 2*Dp)  f32
                       bias_ref,                      # (1, 1, S) additive mask bias
                       o_ref,                         # (1, tq, Dp)
                       q_scr, m_scr, l_scr, acc_scr,
                       *, approx_recip):
    b = pl.program_id(0)
    kv = pl.program_id(2)
    nk = pl.num_programs(2)
    Dp = wq_ref.shape[1]
    tk = xk_ref.shape[1]
    S = bias_ref.shape[2]

    @pl.when(kv == 0)
    def _init():
        # Project Q once per (batch, q-tile); 1/sqrt(D) already folded into wq/bq.
        q = jnp.dot(xq_ref[0], wq_ref[...],
                    preferred_element_type=jnp.float32) + bq_ref[...]
        q_scr[...] = q.astype(q_scr.dtype)
        m_scr[...] = jnp.full_like(m_scr, -jnp.inf)
        l_scr[...] = jnp.zeros_like(l_scr)
        acc_scr[...] = jnp.zeros_like(acc_scr)

    @pl.when(vis_ref[b * nk + kv] > 0)                # skip fully-masked key tiles
    def _update():
        # Project this K/V tile from the streamed x tile (fused 2*Dp-wide matmul).
        kvp = jnp.dot(xk_ref[0], wkv_ref[...],
                      preferred_element_type=jnp.float32) + bkv_ref[...]
        k = kvp[:, :Dp].astype(q_scr.dtype)           # static, 128-aligned slices
        v = kvp[:, Dp:].astype(q_scr.dtype)

        # QK^T: contract last dims directly on the MXU (no explicit transpose).
        s = jax.lax.dot_general(
            q_scr[...], k, dimension_numbers=(((1,), (1,)), ((), ())),
            preferred_element_type=jnp.float32)       # (tq, tk) f32

        # Additive mask bias, hoisted per-batch; per-tile slice taken here.
        if tk == S:
            bias = bias_ref[0]                        # (1, S) == (1, tk)
        else:
            idx = pl.multiple_of(kv * tk, tk)
            bias = bias_ref[0, :, pl.ds(idx, tk)]     # (1, tk)
        s = s + bias

        m_prev = m_scr[...]                           # (tq, 1)
        m_new = jnp.maximum(m_prev, jnp.max(s, axis=-1, keepdims=True))
        alpha = jnp.exp(m_prev - m_new)
        p = jnp.exp(s - m_new)                        # f32 softmax numerator
        l_scr[...] = alpha * l_scr[...] + jnp.sum(p, axis=-1, keepdims=True)
        acc_scr[...] = alpha * acc_scr[...] + jax.lax.dot_general(
            p.astype(v.dtype), v, dimension_numbers=(((1,), (0,)), ((), ())),
            preferred_element_type=jnp.float32)
        m_scr[...] = m_new

    @pl.when(kv == nk - 1)
    def _final():
        inv_l = pl.reciprocal(l_scr[...], approx=approx_recip)
        o_ref[0] = (acc_scr[...] * inv_l).astype(o_ref.dtype)


def masked_self_attention(x, mask, wq, bq, wk, bk, wv, bv, *,
                          dot_dtype=jnp.bfloat16, approx_recip=True,
                          block_q=512, block_k=512, lane_pad=128,
                          vmem_limit_bytes=None):
    """x: (B, S, E); mask: (B, S) {0,1}; wq/wk/wv: (E, D); bq/bk/bv: (1, D).

    Returns (B, S, D) in x.dtype.  Default path uses bf16 MXU operands with
    f32 accumulation / f32 softmax; pass dot_dtype=jnp.float32 and
    approx_recip=False for the full-precision configuration.
    """
    B, S, E = x.shape
    D = wq.shape[1]
    out_dtype = x.dtype

    # ---- host-side prep ----------------------------------------------------
    scale = 1.0 / math.sqrt(D)                 # fold 1/sqrt(head_dim) into Wq, bq
    Dp = _round_up(D, lane_pad)                # lane-dense head dim (VMEM/output only)

    def pad_w(w):
        return jnp.pad(w, ((0, 0), (0, Dp - D)))

    def pad_b(b):
        return jnp.pad(b, ((0, 0), (0, Dp - D)))

    wq_p = pad_w(wq * scale).astype(dot_dtype)                               # (E, Dp)
    bq_p = pad_b(bq * scale).astype(jnp.float32)                             # (1, Dp)
    wkv_p = jnp.concatenate([pad_w(wk), pad_w(wv)], axis=1).astype(dot_dtype)  # (E, 2Dp)
    bkv_p = jnp.concatenate([pad_b(bk), pad_b(bv)], axis=1).astype(jnp.float32)

    x_in = x.astype(dot_dtype)
    # Additive mask bias: 0 where visible, -1e9 where masked (f32 always).
    mask_bias = jnp.where(mask > 0, 0.0, -1e9).astype(jnp.float32).reshape(B, 1, S)

    tq = _pick_tile(S, block_q)
    tk = _pick_lane_tile(S, block_k)
    nq = S // tq
    nk = S // tk

    # Per-(batch, key-tile) visible counts for tile skipping.  If a batch has
    # no visible key at all, force counts to 1 so nothing is skipped and the
    # online softmax keeps the reference's "average of V" behaviour.
    vis = (mask > 0).astype(jnp.int32).reshape(B, nk, tk).sum(axis=-1)      # (B, nk)
    any_vis = vis.sum(axis=-1, keepdims=True) > 0
    vis = jnp.where(any_vis, vis, 1).reshape(B * nk).astype(jnp.int32)

    itemsize = jnp.dtype(dot_dtype).itemsize
    cost = pl.CostEstimate(
        flops=(2 * B * S * E * Dp                 # Q projection
               + 2 * B * nq * S * E * 2 * Dp      # K/V projection (recomputed per q-tile)
               + 4 * B * S * S * Dp),             # QK^T + PV
        transcendentals=B * S * S,
        bytes_accessed=(B * S * E * itemsize * (1 + nq)
                        + E * 3 * Dp * itemsize
                        + B * S * 4
                        + B * S * Dp * jnp.dtype(out_dtype).itemsize))

    kernel = functools.partial(_fused_attn_kernel, approx_recip=approx_recip)

    out_p = pl.pallas_call(
        kernel,
        out_shape=jax.ShapeDtypeStruct((B, S, Dp), out_dtype),
        grid_spec=pltpu.PrefetchScalarGridSpec(
            num_scalar_prefetch=1,
            grid=(B, nq, nk),
            in_specs=[
                pl.BlockSpec((1, tq, E), lambda b, qi, ki, vis: (b, qi, 0)),   # x (q rows)
                pl.BlockSpec((1, tk, E), lambda b, qi, ki, vis: (b, ki, 0)),   # x (k rows)
                pl.BlockSpec((E, Dp), lambda b, qi, ki, vis: (0, 0)),          # wq (scaled)
                pl.BlockSpec((E, 2 * Dp), lambda b, qi, ki, vis: (0, 0)),      # wk|wv fused
                pl.BlockSpec((1, Dp), lambda b, qi, ki, vis: (0, 0)),          # bq (scaled)
                pl.BlockSpec((1, 2 * Dp), lambda b, qi, ki, vis: (0, 0)),      # bk|bv fused
                pl.BlockSpec((1, 1, S), lambda b, qi, ki, vis: (b, 0, 0)),     # mask bias row
            ],
            out_specs=pl.BlockSpec((1, tq, Dp), lambda b, qi, ki, vis: (b, qi, 0)),
            scratch_shapes=[
                pltpu.VMEM((tq, Dp), dot_dtype),     # projected Q tile
                pltpu.VMEM((tq, 1), jnp.float32),    # running max  m
                pltpu.VMEM((tq, 1), jnp.float32),    # running sum  l
                pltpu.VMEM((tq, Dp), jnp.float32),   # output accumulator
            ]),
        compiler_params=pltpu.CompilerParams(
            dimension_semantics=("parallel", "parallel", "arbitrary"),
            vmem_limit_bytes=vmem_limit_bytes),
        cost_estimate=cost,
    )(vis, x_in, x_in, wq_p, wkv_p, bq_p, bkv_p, mask_bias)

    # Lane-dense padded store in-kernel; strip padding here (cheaper than
    # 16-lane-wide masked stores inside the kernel).
    return out_p[:, :, :D]


def _reference(x, mask, wq, bq, wk, bk, wv, bv):
    q = x @ wq + bq
    k = x @ wk + bk
    v = x @ wv + bv
    d = q.shape[-1]
    s = jnp.einsum("bqd,bkd->bqk", q, k) / math.sqrt(d)
    m = mask.reshape(x.shape[0], 1, x.shape[1])
    s = jnp.where(m == 0, -1e9, s)
    p = jax.nn.softmax(s, axis=-1)
    return jnp.einsum("bqk,bkd->bqd", p, v)


if __name__ == "__main__":
    B, S, E, D = 2, 8, 32, 16

    key = jax.random.PRNGKey(0)
    kx, km, k1, k2, k3, k4, k5, k6 = jax.random.split(key, 8)

    x = jax.random.normal(kx, (B, S, E), dtype=jnp.float32)
    # mask: 0 or 1 per (batch, seq) token; keep at least one unmasked token.
    mask = (jax.random.uniform(km, (B, S)) > 0.3).astype(jnp.float32)
    mask = mask.at[:, 0].set(1.0)

    # torch.nn.Linear-like parameters, stored transposed as (E, D); biases (1, D).
    wscale = 1.0 / math.sqrt(E)
    wq = jax.random.normal(k1, (E, D), dtype=jnp.float32) * wscale
    wk = jax.random.normal(k2, (E, D), dtype=jnp.float32) * wscale
    wv = jax.random.normal(k3, (E, D), dtype=jnp.float32) * wscale
    bq = jax.random.normal(k4, (1, D), dtype=jnp.float32) * wscale
    bk = jax.random.normal(k5, (1, D), dtype=jnp.float32) * wscale
    bv = jax.random.normal(k6, (1, D), dtype=jnp.float32) * wscale

    ref = _reference(x, mask, wq, bq, wk, bk, wv, bv)

    # Full-precision configuration (f32 MXU operands, exact reciprocal).
    out_f32 = masked_self_attention(x, mask, wq, bq, wk, bk, wv, bv,
                                    dot_dtype=jnp.float32, approx_recip=False)
    out_f32 = jax.block_until_ready(out_f32)
    assert out_f32.shape == (B, S, D)
    assert jnp.allclose(out_f32, ref, atol=1e-4, rtol=1e-4), "f32 mismatch vs reference"

    # Default performance configuration: bf16 MXU operands, f32 softmax, EUP recip.
    out_bf16 = masked_self_attention(x, mask, wq, bq, wk, bk, wv, bv)
    out_bf16 = jax.block_until_ready(out_bf16)
    assert out_bf16.shape == (B, S, D)
    assert jnp.allclose(out_bf16, ref, atol=5e-2, rtol=5e-2), "bf16 mismatch vs reference"

    print("KERNEL_OK")
</pallas_src>

<mosaic_0001>
module attributes {stable_mosaic.version = 11 : i64} {
  func.func @_fused_attn_kernel(%arg0: i32, %arg1: i32, %arg2: i32, %arg3: memref<2xi32, #tpu.memory_space<smem>>, %arg4: memref<1x8x32xf32, #tpu.memory_space<vmem>>, %arg5: memref<1x8x32xf32, #tpu.memory_space<vmem>>, %arg6: memref<32x128xf32, #tpu.memory_space<vmem>>, %arg7: memref<32x256xf32, #tpu.memory_space<vmem>>, %arg8: memref<1x128xf32, #tpu.memory_space<vmem>>, %arg9: memref<1x256xf32, #tpu.memory_space<vmem>>, %arg10: memref<1x1x8xf32, #tpu.memory_space<vmem>>, %arg11: memref<1x8x128xf32, #tpu.memory_space<vmem>>, %arg12: memref<8x128xf32, #tpu.memory_space<vmem>>, %arg13: memref<8x1xf32, #tpu.memory_space<vmem>>, %arg14: memref<8x1xf32, #tpu.memory_space<vmem>>, %arg15: memref<8x128xf32, #tpu.memory_space<vmem>>) attributes {dimension_semantics = [#tpu.dimension_semantics<parallel>, #tpu.dimension_semantics<parallel>, #tpu.dimension_semantics<arbitrary>], iteration_bounds = array<i64: 2, 1, 1>, scalar_prefetch = 1 : i64, scratch_operands = 4 : i64, tpu.core_type = #tpu.core_type<tc>, window_params = [{transform_indices = @transform_0, window_bounds = array<i64: 1, 8, 32>}, {transform_indices = @transform_1, window_bounds = array<i64: 1, 8, 32>}, {pipeline_mode = #tpu.pipeline_mode<synchronous>, transform_indices = @transform_2, window_bounds = array<i64: 32, 128>}, {pipeline_mode = #tpu.pipeline_mode<synchronous>, transform_indices = @transform_3, window_bounds = array<i64: 32, 256>}, {pipeline_mode = #tpu.pipeline_mode<synchronous>, transform_indices = @transform_4, window_bounds = array<i64: 1, 128>}, {pipeline_mode = #tpu.pipeline_mode<synchronous>, transform_indices = @transform_5, window_bounds = array<i64: 1, 256>}, {transform_indices = @transform_6, window_bounds = array<i64: 1, 1, 8>}, {transform_indices = @transform_7, window_bounds = array<i64: 1, 8, 128>}]} {
    %c0_i32 = arith.constant 0 : i32
    %0 = arith.cmpi eq, %arg2, %c0_i32 : i32
    %1 = arith.extui %0 : i1 to i32
    %c0_i32_0 = arith.constant 0 : i32
    %2 = arith.cmpi ne, %1, %c0_i32_0 : i32
    scf.if %2 {
      %c0 = arith.constant 0 : index
      %c0_5 = arith.constant 0 : index
      %c0_6 = arith.constant 0 : index
      %13 = vector.load %arg4[%c0, %c0_5, %c0_6] : memref<1x8x32xf32, #tpu.memory_space<vmem>>, vector<1x8x32xf32>
      %14 = vector.shape_cast %13 : vector<1x8x32xf32> to vector<8x32xf32>
      %c0_7 = arith.constant 0 : index
      %c0_8 = arith.constant 0 : index
      %15 = vector.load %arg6[%c0_7, %c0_8] : memref<32x128xf32, #tpu.memory_space<vmem>>, vector<32x128xf32>
      %cst = arith.constant dense<0.000000e+00> : vector<8x128xf32>
      %16 = tpu.matmul %14, %15, %cst {dimension_numbers = #tpu.dot_dimension_numbers<[1], [0], [0], [1], [0, 0, 1, 1], [], []>} : vector<8x32xf32>, vector<32x128xf32>, vector<8x128xf32> -> vector<8x128xf32>
      %c0_9 = arith.constant 0 : index
      %c0_10 = arith.constant 0 : index
      %17 = vector.load %arg8[%c0_9, %c0_10] : memref<1x128xf32, #tpu.memory_space<vmem>>, vector<1x128xf32>
      %18 = vector.broadcast %17 : vector<1x128xf32> to vector<8x128xf32>
      %19 = arith.addf %16, %18 : vector<8x128xf32>
      %c0_11 = arith.constant 0 : index
      %c0_12 = arith.constant 0 : index
      %20 = vector.load %arg12[%c0_11, %c0_12] : memref<8x128xf32, #tpu.memory_space<vmem>>, vector<8x128xf32>
      tpu.vector_store %arg12[%c0_11, %c0_12], %19 {strides = array<i32>} : memref<8x128xf32, #tpu.memory_space<vmem>>, vector<8x128xf32>,
      %cst_13 = arith.constant 0xFF800000 : f32
      %21 = vector.broadcast %cst_13 : f32 to vector<8x1xf32>
      %c0_14 = arith.constant 0 : index
      %c0_15 = arith.constant 0 : index
      %22 = vector.load %arg13[%c0_14, %c0_15] : memref<8x1xf32, #tpu.memory_space<vmem>>, vector<8x1xf32>
      tpu.vector_store %arg13[%c0_14, %c0_15], %21 {strides = array<i32>} : memref<8x1xf32, #tpu.memory_space<vmem>>, vector<8x1xf32>,
      %cst_16 = arith.constant 0.000000e+00 : f32
      %23 = vector.broadcast %cst_16 : f32 to vector<8x1xf32>
      %c0_17 = arith.constant 0 : index
      %c0_18 = arith.constant 0 : index
      %24 = vector.load %arg14[%c0_17, %c0_18] : memref<8x1xf32, #tpu.memory_space<vmem>>, vector<8x1xf32>
      tpu.vector_store %arg14[%c0_17, %c0_18], %23 {strides = array<i32>} : memref<8x1xf32, #tpu.memory_space<vmem>>, vector<8x1xf32>,
      %cst_19 = arith.constant 0.000000e+00 : f32
      %25 = vector.broadcast %cst_19 : f32 to vector<8x128xf32>
      %c0_20 = arith.constant 0 : index
      %c0_21 = arith.constant 0 : index
      %26 = vector.load %arg15[%c0_20, %c0_21] : memref<8x128xf32, #tpu.memory_space<vmem>>, vector<8x128xf32>
      tpu.vector_store %arg15[%c0_20, %c0_21], %25 {strides = array<i32>} : memref<8x128xf32, #tpu.memory_space<vmem>>, vector<8x128xf32>,
    } else {
    }
    %c1_i32 = arith.constant 1 : i32
    %3 = arith.muli %arg0, %c1_i32 : i32
    %4 = arith.addi %3, %arg2 : i32
    %5 = arith.index_cast %4 : i32 to index
    %6 = memref.load %arg3[%5] : memref<2xi32, #tpu.memory_space<smem>>
    %c0_i32_1 = arith.constant 0 : i32
    %7 = arith.cmpi sgt, %6, %c0_i32_1 : i32
    %8 = arith.extui %7 : i1 to i32
    %c0_i32_2 = arith.constant 0 : i32
    %9 = arith.cmpi ne, %8, %c0_i32_2 : i32
    scf.if %9 {
      %c0 = arith.constant 0 : index
      %c0_5 = arith.constant 0 : index
      %c0_6 = arith.constant 0 : index
      %13 = vector.load %arg5[%c0, %c0_5, %c0_6] : memref<1x8x32xf32, #tpu.memory_space<vmem>>, vector<1x8x32xf32>
      %14 = vector.shape_cast %13 : vector<1x8x32xf32> to vector<8x32xf32>
      %c0_7 = arith.constant 0 : index
      %c0_8 = arith.constant 0 : index
      %15 = vector.load %arg7[%c0_7, %c0_8] : memref<32x256xf32, #tpu.memory_space<vmem>>, vector<32x256xf32>
      %cst = arith.constant dense<0.000000e+00> : vector<8x256xf32>
      %16 = tpu.matmul %14, %15, %cst {dimension_numbers = #tpu.dot_dimension_numbers<[1], [0], [0], [1], [0, 0, 1, 1], [], []>} : vector<8x32xf32>, vector<32x256xf32>, vector<8x256xf32> -> vector<8x256xf32>
      %c0_9 = arith.constant 0 : index
      %c0_10 = arith.constant 0 : index
      %17 = vector.load %arg9[%c0_9, %c0_10] : memref<1x256xf32, #tpu.memory_space<vmem>>, vector<1x256xf32>
      %18 = vector.broadcast %17 : vector<1x256xf32> to vector<8x256xf32>
      %19 = arith.addf %16, %18 : vector<8x256xf32>
      %20 = vector.extract_strided_slice %19 {offsets = [0, 0], sizes = [8, 128], strides = [1, 1]} : vector<8x256xf32> to vector<8x128xf32>
      %21 = vector.extract_strided_slice %19 {offsets = [0, 128], sizes = [8, 128], strides = [1, 1]} : vector<8x256xf32> to vector<8x128xf32>
      %c0_11 = arith.constant 0 : index
      %c0_12 = arith.constant 0 : index
      %22 = vector.load %arg12[%c0_11, %c0_12] : memref<8x128xf32, #tpu.memory_space<vmem>>, vector<8x128xf32>
      %cst_13 = arith.constant dense<0.000000e+00> : vector<8x8xf32>
      %23 = tpu.matmul %22, %20, %cst_13 {dimension_numbers = #tpu.dot_dimension_numbers<[1], [1], [0], [0], [0, 0, 1, 0], [], []>} : vector<8x128xf32>, vector<8x128xf32>, vector<8x8xf32> -> vector<8x8xf32>
      %c0_14 = arith.constant 0 : index
      %c0_15 = arith.constant 0 : index
      %c0_16 = arith.constant 0 : index
      %24 = vector.load %arg10[%c0_14, %c0_15, %c0_16] : memref<1x1x8xf32, #tpu.memory_space<vmem>>, vector<1x1x8xf32>
      %25 = vector.shape_cast %24 : vector<1x1x8xf32> to vector<1x8xf32>
      %26 = vector.broadcast %25 : vector<1x8xf32> to vector<8x8xf32>
      %27 = arith.addf %23, %26 : vector<8x8xf32>
      %c0_17 = arith.constant 0 : index
      %c0_18 = arith.constant 0 : index
      %28 = vector.load %arg13[%c0_17, %c0_18] : memref<8x1xf32, #tpu.memory_space<vmem>>, vector<8x1xf32>
      %cst_19 = arith.constant dense<0xFF800000> : vector<8xf32>
      %29 = vector.multi_reduction <maximumf>, %27, %cst_19 [1] : vector<8x8xf32> to vector<8xf32>
      %30 = vector.shape_cast %29 : vector<8xf32> to vector<8x1xf32>
      %31 = arith.maximumf %28, %30 : vector<8x1xf32>
      %32 = arith.subf %28, %31 : vector<8x1xf32>
      %33 = math.exp %32 : vector<8x1xf32>
      %34 = vector.broadcast %31 : vector<8x1xf32> to vector<8x8xf32>
      %35 = arith.subf %27, %34 : vector<8x8xf32>
      %36 = math.exp %35 : vector<8x8xf32>
      %c0_20 = arith.constant 0 : index
      %c0_21 = arith.constant 0 : index
      %37 = vector.load %arg14[%c0_20, %c0_21] : memref<8x1xf32, #tpu.memory_space<vmem>>, vector<8x1xf32>
      %38 = arith.mulf %33, %37 : vector<8x1xf32>
      %cst_22 = arith.constant dense<0.000000e+00> : vector<8xf32>
      %39 = vector.multi_reduction <add>, %36, %cst_22 [1] : vector<8x8xf32> to vector<8xf32>
      %40 = vector.shape_cast %39 : vector<8xf32> to vector<8x1xf32>
      %41 = arith.addf %38, %40 : vector<8x1xf32>
      %c0_23 = arith.constant 0 : index
      %c0_24 = arith.constant 0 : index
      %42 = vector.load %arg14[%c0_23, %c0_24] : memref<8x1xf32, #tpu.memory_space<vmem>>, vector<8x1xf32>
      tpu.vector_store %arg14[%c0_23, %c0_24], %41 {strides = array<i32>} : memref<8x1xf32, #tpu.memory_space<vmem>>, vector<8x1xf32>,
      %c0_25 = arith.constant 0 : index
      %c0_26 = arith.constant 0 : index
      %43 = vector.load %arg15[%c0_25, %c0_26] : memref<8x128xf32, #tpu.memory_space<vmem>>, vector<8x128xf32>
      %44 = vector.broadcast %33 : vector<8x1xf32> to vector<8x128xf32>
      %45 = arith.mulf %44, %43 : vector<8x128xf32>
      %cst_27 = arith.constant dense<0.000000e+00> : vector<8x128xf32>
      %46 = tpu.matmul %36, %21, %cst_27 {dimension_numbers = #tpu.dot_dimension_numbers<[1], [0], [0], [1], [0, 0, 1, 1], [], []>} : vector<8x8xf32>, vector<8x128xf32>, vector<8x128xf32> -> vector<8x128xf32>
      %47 = arith.addf %45, %46 : vector<8x128xf32>
      %c0_28 = arith.constant 0 : index
      %c0_29 = arith.constant 0 : index
      %48 = vector.load %arg15[%c0_28, %c0_29] : memref<8x128xf32, #tpu.memory_space<vmem>>, vector<8x128xf32>
      tpu.vector_store %arg15[%c0_28, %c0_29], %47 {strides = array<i32>} : memref<8x128xf32, #tpu.memory_space<vmem>>, vector<8x128xf32>,
      %c0_30 = arith.constant 0 : index
      %c0_31 = arith.constant 0 : index
      %49 = vector.load %arg13[%c0_30, %c0_31] : memref<8x1xf32, #tpu.memory_space<vmem>>, vector<8x1xf32>
      tpu.vector_store %arg13[%c0_30, %c0_31], %31 {strides = array<i32>} : memref<8x1xf32, #tpu.memory_space<vmem>>, vector<8x1xf32>,
    } else {
    }
    %c0_i32_3 = arith.constant 0 : i32
    %10 = arith.cmpi eq, %arg2, %c0_i32_3 : i32
    %11 = arith.extui %10 : i1 to i32
    %c0_i32_4 = arith.constant 0 : i32
    %12 = arith.cmpi ne, %11, %c0_i32_4 : i32
    scf.if %12 {
      %c0 = arith.constant 0 : index
      %c0_5 = arith.constant 0 : index
      %13 = vector.load %arg14[%c0, %c0_5] : memref<8x1xf32, #tpu.memory_space<vmem>>, vector<8x1xf32>
      %14 = tpu.reciprocal %13 : vector<8x1xf32> -> vector<8x1xf32>
      %c0_6 = arith.constant 0 : index
      %c0_7 = arith.constant 0 : index
      %15 = vector.load %arg15[%c0_6, %c0_7] : memref<8x128xf32, #tpu.memory_space<vmem>>, vector<8x128xf32>
      %16 = vector.broadcast %14 : vector<8x1xf32> to vector<8x128xf32>
      %17 = arith.mulf %15, %16 : vector<8x128xf32>
      %c0_8 = arith.constant 0 : index
      %c0_9 = arith.constant 0 : index
      %c0_10 = arith.constant 0 : index
      %18 = vector.load %arg11[%c0_8, %c0_9, %c0_10] : memref<1x8x128xf32, #tpu.memory_space<vmem>>, vector<1x8x128xf32>
      %19 = vector.shape_cast %18 : vector<1x8x128xf32> to vector<8x128xf32>
      %20 = vector.shape_cast %17 : vector<8x128xf32> to vector<1x8x128xf32>
      tpu.vector_store %arg11[%c0_8, %c0_9, %c0_10], %20 {strides = array<i32>} : memref<1x8x128xf32, #tpu.memory_space<vmem>>, vector<1x8x128xf32>,
    } else {
    }
    return
  }
  func.func @transform_0(%arg0: i32, %arg1: i32, %arg2: i32, %arg3: memref<2xi32, #tpu.memory_space<smem>>) -> (i32, i32, i32) {
    %c0_i32 = arith.constant 0 : i32
    %c0_i32_0 = arith.constant 0 : i32
    return %arg0, %arg1, %c0_i32 : i32, i32, i32
  }
  func.func @transform_1(%arg0: i32, %arg1: i32, %arg2: i32, %arg3: memref<2xi32, #tpu.memory_space<smem>>) -> (i32, i32, i32) {
    %c0_i32 = arith.constant 0 : i32
    %c0_i32_0 = arith.constant 0 : i32
    return %arg0, %arg2, %c0_i32 : i32, i32, i32
  }
  func.func @transform_2(%arg0: i32, %arg1: i32, %arg2: i32, %arg3: memref<2xi32, #tpu.memory_space<smem>>) -> (i32, i32) {
    %c0_i32 = arith.constant 0 : i32
    %c0_i32_0 = arith.constant 0 : i32
    %c0_i32_1 = arith.constant 0 : i32
    return %c0_i32, %c0_i32_0 : i32, i32
  }
  func.func @transform_3(%arg0: i32, %arg1: i32, %arg2: i32, %arg3: memref<2xi32, #tpu.memory_space<smem>>) -> (i32, i32) {
    %c0_i32 = arith.constant 0 : i32
    %c0_i32_0 = arith.constant 0 : i32
    %c0_i32_1 = arith.constant 0 : i32
    return %c0_i32, %c0_i32_0 : i32, i32
  }
  func.func @transform_4(%arg0: i32, %arg1: i32, %arg2: i32, %arg3: memref<2xi32, #tpu.memory_space<smem>>) -> (i32, i32) {
    %c0_i32 = arith.constant 0 : i32
    %c0_i32_0 = arith.constant 0 : i32
    %c0_i32_1 = arith.constant 0 : i32
    return %c0_i32, %c0_i32_0 : i32, i32
  }
  func.func @transform_5(%arg0: i32, %arg1: i32, %arg2: i32, %arg3: memref<2xi32, #tpu.memory_space<smem>>) -> (i32, i32) {
    %c0_i32 = arith.constant 0 : i32
    %c0_i32_0 = arith.constant 0 : i32
    %c0_i32_1 = arith.constant 0 : i32
    return %c0_i32, %c0_i32_0 : i32, i32
  }
  func.func @transform_6(%arg0: i32, %arg1: i32, %arg2: i32, %arg3: memref<2xi32, #tpu.memory_space<smem>>) -> (i32, i32, i32) {
    %c0_i32 = arith.constant 0 : i32
    %c0_i32_0 = arith.constant 0 : i32
    %c0_i32_1 = arith.constant 0 : i32
    return %arg0, %c0_i32, %c0_i32_0 : i32, i32, i32
  }
  func.func @transform_7(%arg0: i32, %arg1: i32, %arg2: i32, %arg3: memref<2xi32, #tpu.memory_space<smem>>) -> (i32, i32, i32) {
    %c0_i32 = arith.constant 0 : i32
    %c0_i32_0 = arith.constant 0 : i32
    return %arg0, %arg1, %c0_i32 : i32, i32, i32
  }
}

</mosaic_0001>

<bundles_post_ra>
// kernel: tpu_custom_call.1
= control target key start
LH: loop header
LB: loop body
LE: loop exit
PB: predicated region body
PF: predicated region fallthrough
CT: control target
= control target key end

     0   :  { %s1214_s30 = smov [#allocation7]   ;;  %s1484_s0 = inlined_call_operand.hbm [shape: s32[2], index: 0, kind: input, shape index: {}]   ;;  %s1485_s1 = inlined_call_operand.hbm [shape: f32[2,8,32], index: 1, kind: input, shape index: {}]   ;;  %s1486_s2 = inlined_call_operand.hbm [shape: f32[2,8,32], index: 2, kind: input, shape index: {}]   ;;  %s1487_s3 = inlined_call_operand.hbm [shape: f32[32,128], index: 3, kind: input, shape index: {}]   ;;  %s1488_s4 = inlined_call_operand.hbm [shape: f32[32,256], index: 4, kind: input, shape index: {}]   ;;  %s1489_s5 = inlined_call_operand.hbm [shape: f32[1,128], index: 5, kind: input, shape index: {}]   ;;  %s1490_s6 = inlined_call_operand.vmem [shape: f32[1,256], index: 6, kind: input, shape index: {}]   ;;  %s1491_s7 = inlined_call_operand.vmem [shape: f32[2,1,8], index: 7, kind: input, shape index: {}]   ;;  %s1492_s8 = inlined_call_operand.hbm [shape: f32[2,8,128], index: 8, kind: output, shape index: {}]  }
   0x1   :  { %1497 = sst [smem:[#allocation29_spill]] %s1487_s3  ;;  %s14_s29 = sshll.u32 %s1484_s0, 4  ;;  %s15_s29 = int_to_ptr.hbm [resolvable:$true] %s14_s29 }
   0x2   :  { %1498 = sst [smem:[#allocation30_spill]] %s1488_s4 }
   0x3   :  { %1499 = sst [smem:[#allocation31_spill]] %s1489_s5 }
   0x4   :  { %17 = dma.hbm_to_smem %s15_s29, 16, %s1214_s30, [#allocation6] }
   0x5   :  { %1168 = dma.done.wait [#allocation6], 16 }
   0x6   :  { %1169 = vsyncadd [#allocation6], 4294967280 }
   0x7   :  { %20 = sfence }
   0x8   :  { %21 = vsyncpa [#allocation9], 0 }
   0x9   :  { %23 = vsyncpa [#allocation9 + $0x1], 0 }
   0xa   :  { %24 = vsyncpa [#allocation12], 0 }
   0xb   :  { %26 = vsyncpa [#allocation12 + $0x1], 0 }
   0xc   :  { %27 = vsyncpa [#allocation15], 0 }
   0xd   :  { %28 = vsyncpa [#allocation10], 0 }
   0xe   :  { %30 = vsyncpa [#allocation10 + $0x1], 0  ;;  %s1274_s9 = smov 0   ;;  %s1276_s10 = smov 0  }
   0xf   :  { %s1278_s11 = smov 0   ;;  %s1280_s0 = smov 0  }
  0x10   :  { %s1282_s12 = smov 0   ;;  %s1284_s13 = smov 0  }
  0x11 LB: > { %1500 = sst [smem:[#allocation24_spill]] %s1200_s11  ;;  %s1305_s14 = sadd.s32 4294967295, %s1212_s13   ;;  %s1212_s13 = sphi %s1284_s13, %s36_s13   ;;  %s1208_s12 = sphi %s1282_s12, %s1518_s12   ;;  %s1204_s0 = sphi %s1280_s0, %s1517_s0   ;;  %s1200_s11 = sphi %s1278_s11, %s1516_s11   ;;  %s1196_s10 = sphi %s1276_s10, %s1520_s10   ;;  %s1192_s9 = sphi %s1274_s9, %s1519_s9  }
  0x12   : > { %1501 = sst [smem:[#allocation25_spill]] %s1208_s12  ;;  %p811_p0 = scmp.ge.s32.totalorder %s1212_s13, 1 }
  0x13   : > { %p78_p1 = scmp.eq.s32.totalorder %s1305_s14, 0  ;;  %p254_p2 = scmp.lt.s32.totalorder %s1212_s13, 3 }
  0x14   : > { %s1502_s3 = sld [smem:[#allocation29_spill]]  ;;  %s1215_s19 = smov [#allocation13]  }
  0x15   : > { %p1313_p3 = pnand %p811_p0, %p254_p2  ;;  %s267_s20 = sshll.u32 %s1215_s19, 4  ;;  %s268_s20 = int_to_ptr.vmem [resolvable:$true] %s267_s20 }
  0x16   : > { %p815_p6 = scmp.ge.s32.totalorder %s1212_s13, 2  ;;  %s1505_s4 = sld [smem:[#allocation30_spill]] }
  0x17   : > { %p854_p4 = pneg %p1313_p3  ;;  %s1216_s25 = smov 128  }
  0x18   : > { %s1217_s26 = smov 8   ;;  %s1218_s27 = smov [#allocation14]  }
  0x19   : > { %p1321_p5 = pnand %p854_p4, %p78_p1  ;;  %s281_s28 = sshll.u32 %s1218_s27, 4  ;;  %s282_s28 = int_to_ptr.vmem [resolvable:$true] %s281_s28 }
  0x1a   : > { %s265_s17 = sshll.u32 %s1502_s3, 4  ;;  %s1219_s29 = smov 256   ;;  %s266_s17 = int_to_ptr.hbm [resolvable:$true] %s265_s17 }
  0x1b   : > { %857 = dma.hbm_to_vmem [thread:$0]  (!%p1321_p5), %s266_s17, 512, %s268_s20, [#allocation12], %s1216_s25, %s1216_s25, %s1217_s26  }
  0x1c   : > { %s279_s24 = sshll.u32 %s1505_s4, 4  ;;  %s1220_s30 = smov 16   ;;  %s280_s24 = int_to_ptr.hbm [resolvable:$true] %s279_s24 }
  0x1d   : > { %860 = dma.hbm_to_vmem [thread:$0]  (!%p1321_p5), %s280_s24, 1024, %s282_s28, [#allocation15], %s1219_s29, %s1219_s29, %s1220_s30  }
  0x1e   : > { %s1506_s5 = sld [smem:[#allocation31_spill]]  ;;  %s1221_s17 = smov [#allocation16]  }
  0x1f   : > { %s296_s20 = sshll.u32 %s1221_s17, 4  ;;  %s810_s22 = sadd.s32 4294967294, %s1212_s13   ;;  %s297_s20 = int_to_ptr.vmem [resolvable:$true] %s296_s20 }
  0x20   : > { %s55_s23 = sadd.s32 1, %s1208_s12  ;;  %s64_s25 = sadd.s32 1, %s1200_s11 }
  0x21   : > { %p57_p7 = scmp.ge.s32.totalorder %s55_s23, 2  ;;  %p71_p8 = scmp.ne.s32.totalorder %s1200_s11, %s1196_s10 }
  0x22   : > { %p72_p9 = scmp.eq.s32.totalorder %s1212_s13, 0  ;;  %p77_p10 = scmp.ne.s32.totalorder %s1196_s10, %s1192_s9 }
  0x23   : > { %s1522_s23 = smov (%p57_p7, %s55_s23), 0  ;;  %p241_p13 = scmp.eq.s32.totalorder %s1305_s14, 1 }
  0x24   : > { %s294_s19 = sshll.u32 %s1506_s5, 4  ;;  %1507 = sst [smem:[#allocation26_spill]] %s1522_s23  ;;  %s295_s19 = int_to_ptr.hbm [resolvable:$true] %s294_s19 }
  0x25   : > { %863 = dma.hbm_to_vmem [thread:$0]  (!%p1321_p5), %s295_s19, 16, %s297_s20, [#allocation15]  }
  0x26   : > { %p1348_p11 = por %p72_p9, %p71_p8  ;;  %p1354_p12 = por %p78_p1, %p77_p10 }
  0x27   : > { %s59_s26 = ssub.s32 %s1208_s12, %s1522_s23  ;;  %p247_p2 = scmp.eq.s32.totalorder %s810_s22, 1 }
  0x28   : > { %p62_p0 = scmp.eq.s32.totalorder %s59_s26, 0  ;;  %p1361_p4 = por %p241_p13, %p71_p8 }
  0x29   : > { %p878_p5 = scmp.lt.s32.totalorder %s1212_s13, 2  ;;  %p1369_p7 = por %p247_p2, %p77_p10 }
  0x2a   : > { %s1367_s28 = scalar_select %p62_p0, %s1200_s11, %s64_s25  }
  0x2b   : > { %s1512_s29 = scalar_select %p1369_p7, 1, 0 }
  0x2c   : > { %1511 = sst [smem:[#allocation27_spill]] %s1367_s28  ;;  %s310_s30 = sand.u32 1, %s1200_s11  }
  0x2d   : > { %1513 = sst [smem:[#allocation28_spill]] %s1512_s29  ;;  %s816_s15 = sshll.u32 %s310_s30, 3 }
  0x2e   : > { %s817_s16 = sshll.u32 %s1208_s12, 3  ;;  %s314_s22 = scalar_lea.vmem [#allocation8], %s816_s15 }
  0x2f   : > { %s319_s20 = scalar_lea.hbm %s1485_s1, %s817_s16  ;;  %s323_s26 = sshll.u32 %s314_s22, 4  ;;  %s324_s26 = int_to_ptr.vmem [resolvable:$true] %s323_s26 }
  0x30   : > { %s321_s3 = sshll.u32 %s319_s20, 4  ;;  %p865_p8 = pnand %p878_p5, %p1348_p11  ;;  %s322_s3 = int_to_ptr.hbm [resolvable:$true] %s321_s3 }
  0x31   : > { %s339_s5 = scalar_lea.hbm %s1486_s2, %s817_s16  ;;  %s330_s23 = sand.u32 1, %s1212_s13  }
  0x32   : > { %s311_s28 = scalar_lea.sflag [#allocation9], %s310_s30  ;;  %s341_s11 = sshll.u32 %s339_s5, 4  ;;  %s342_s11 = int_to_ptr.hbm [resolvable:$true] %s341_s11 }
  0x33   : > { %867 = dma.hbm_to_vmem [thread:$0]  (!%p865_p8), %s322_s3, 128, %s324_s26, %s311_s28  }
  0x34   : > { %s334_s12 = scalar_lea.vmem [#allocation11], %s816_s15  ;;  %s331_s19 = scalar_lea.sflag [#allocation12], %s330_s23 }
  0x35   : > { %s343_s29 = sshll.u32 %s334_s12, 4  ;;  %358 = sbr.rel (%p1313_p3) target bundleno = 995 (0x3e3), region = 48  ;;  %s344_s29 = int_to_ptr.vmem [resolvable:$true] %s343_s29 }
  0x36   : > { %870 = dma.hbm_to_vmem [thread:$0]  (!%p865_p8), %s342_s11, 128, %s344_s29, %s331_s19  }
  0x37   : > { %s1387_s24 = sand.u32 (!%p1313_p3), 1, %s1196_s10  }
  0x38   : > { %s1390_s4 = sshll.u32 (!%p1313_p3), %s1387_s24, 3  ;;  %s361_s3 = scalar_lea.sflag (!%p1313_p3), [#allocation9], %s1387_s24 }
  0x39   : > { %s364_s5 = scalar_lea.vmem (!%p1313_p3), [#allocation8], %s1390_s4 }
  0x3a   : > { %1171 = dma.done.wait (%p1354_p12), %s361_s3, 128  }
  0x3b   : > { %1173 = vsyncadd (%p1354_p12), %s361_s3, 4294967168  ;;  %s370_s11 = sand.u32 1, %s1305_s14   ;;  %s374_s18 = scalar_lea.vmem [#allocation11], %s1390_s4 }
  0x3c   : > { %s371_s12 = scalar_lea.sflag [#allocation12], %s370_s11 }
  0x3d   : > { %1175 = dma.done.wait (%p1354_p12), %s371_s12, 128  }
  0x3e   : > { %1177 = vsyncadd (%p1354_p12), %s371_s12, 4294967168 }
  0x3f   : > { %1179 = dma.done.wait (%p78_p1), [#allocation12], 512  }
  0x40   : > { %1181 = vsyncadd (%p78_p1), [#allocation12], 4294966784 }
  0x41   : > { %1183 = dma.done.wait (%p78_p1), [#allocation15], 1040  }
  0x42   : > { %1185 = vsyncadd (%p78_p1), [#allocation15], 4294966256  ;;  %vm470_vm0 = vcmask 7168   ;;  %v1222_v0 = vmov -inf   ;;  %s475_s23 = sld [smem:[#allocation7 + %s1204_s0]]  ;;  %p429_p3 = scmp.lt.s32.totalorder %s1204_s0, 1 }
  0x43   : > { %471 = vst.msk [vmem:[#allocation3] sm:$0xff] %vm470_vm0, %v1222_v0  ;;  %v1223_v1 = vmov 0.0   ;;  %v440_v2 = vld [vmem:[#allocation13 + $0x18] sm:$0xff]  ;;  %v439_v3 = vld [vmem:[#allocation13 + $0x10] sm:$0xff]  ;;  %v438_v4 = vld [vmem:[#allocation13 + $0x8] sm:$0xff]  ;;  %vm445_vm1 = vcmask 261120  }
  0x44   : > { %472 = vst.msk [vmem:[#allocation4] sm:$0xff] %vm470_vm0, %v1223_v1  ;;  %s1417_s21 = scalar_select %p429_p3, %s1204_s0, 1  ;;  %461 = vmatpush.msra.mxu0 %v440_v2  ;;  %v437_v5 = vld [vmem:[#allocation13] sm:$0xff] }
  0x45   : > { %473 = vst [vmem:[#allocation5] sm:$0xff] %v1223_v1  ;;  %v436_v6 = vld [vmem:[%s364_s5] sm:$0xff]  ;;  %s428_s30 = scalar_lea.vmem [#allocation17], %s1390_s4 }
  0x46   : > { %s431_s14 = scalar_lea.vmem %s1491_s7, %s1417_s21  ;;  %462 = vmatpush.msra.mxu0 %v439_v3  ;;  %v943_v7 = vld [vmem:[#allocation16] ss:$0 sm:$0xff] }
  0x48   : > { %463 = vmatpush.msra.mxu0 %v438_v4  ;;  %p828_p1 = scmp.le.s32.totalorder %s475_s23, 0 }
  0x4a   : > { %464 = vmatpush.msra.mxu0 %v437_v5 }
  0x4b   : > { %827 = vmatmul.msk.f32.vlgmr.msra.gmra.mxu0 %vm445_vm1, %v436_v6 }
  0xc7   : > { %479 = sbr.rel (%p828_p1) target bundleno = 857 (0x359), region = 76 }
  0xc8   : > { %v466_v8 = vpop.f32.mrf.mxu0 }
  0xc9   : > { %v467_v9 = vadd.f32 %v943_v7, %v466_v8 }
  0xcb   : > { %469 = vst [vmem:[#allocation2] sm:$0xff] %v467_v9 }
  0xcc   : > { %v487_v10 = vld [vmem:[#allocation14 + $0x30] sm:$0xff]  ;;  %v485_v11 = vld [vmem:[#allocation14 + $0x20] sm:$0xff]  ;;  %v488_v20 = vld [vmem:[#allocation14 + $0x38] sm:$0xff]  ;;  %vm565_vm2 = vcmask 64512   ;;  %v1224_v28 = vmov 0  }
  0xcd   : > { %511 = vmatpush.msra.mxu0 %v487_v10  ;;  %v483_v12 = vld [vmem:[#allocation14 + $0x10] sm:$0xff]  ;;  %v481_v13 = vld [vmem:[#allocation14] sm:$0xff]  ;;  %v486_v21 = vld [vmem:[#allocation14 + $0x28] sm:$0xff]  ;;  %531 = vmatpush.msra.mxu1 %v488_v20 }
  0xce   : > { %v480_v14 = vld [vmem:[%s374_s18] sm:$0xff]  ;;  %v489_v15 = vld [vmem:[%s1490_s6] sm:$0x3]  ;;  %v482_v23 = vld [vmem:[#allocation14 + $0x8] sm:$0xff]  ;;  %944 = vset.pattern.permute.xlu0 %v1224_v28  ;;  %945 = vset.pattern.permute.xlu1 %v1224_v28 }
  0xcf   : > { %512 = vmatpush.msra.mxu0 %v485_v11  ;;  %v491_v16 = vperm.slane %v489_v15, 0  ;;  %v484_v22 = vld [vmem:[#allocation14 + $0x18] sm:$0xff]  ;;  %532 = vmatpush.msra.mxu1 %v486_v21  ;;  %v946_v24 = vld [vmem:[%s431_s14] ss:$0 sm:$0xff]  ;;  %v564_v29 = vld [vmem:[#allocation3] sm:$0xff]  ;;  %v492_v36 = vperm.slane %v489_v15, 1 }
  0xd0   : > { %v581_v44 = vld [vmem:[#allocation4] sm:$0xff]  ;;  %v589_v48 = vld [vmem:[#allocation5] sm:$0xff] }
  0xd1   : > { %513 = vmatpush.msra.mxu0 %v483_v12  ;;  %533 = vmatpush.msra.mxu1 %v484_v22 }
  0xd2   : > { %v539_v19 = vld [vmem:[#allocation2] sm:$0xff] }
  0xd3   : > { %514 = vmatpush.msra.mxu0 %v481_v13  ;;  %534 = vmatpush.msra.mxu1 %v482_v23 }
  0xd4   : > { %829 = vmatmul.msk.f32.vlgmr.msra.gmra.mxu0 %vm445_vm1, %v480_v14  ;;  %830 = vmatmul.msk.f32.vlgmr.msra.gmra.mxu1 %vm445_vm1, %v480_v14 }
 0x151   : > { %v516_v17 = vpop.f32.mrf.mxu0  ;;  %v536_v35 = vpop.f32.mrf.mxu1 }
 0x152   : > { %v517_v18 = vadd.f32 %v516_v17, %v491_v16  ;;  %v537_v37 = vadd.f32 %v536_v35, %v492_v36 }
 0x154   : > { %559 = vmatpush.xpose.msra.mxu2 %v517_v18  ;;  %614 = vmatpush.msra.mxu3 %v537_v37 }
 0x157   : > { %560 = vmatmul.f32.vlgmr.msra.gmra.mxu2 %v539_v19 }
 0x1da   : > { %v561_v25 = vpop.f32.mrf.mxu2 }
 0x1db   : > { %v562_v26 = vadd.f32 %v946_v24, %v561_v25 }
 0x1dd   : > { %v566_v27 = vsel %vm565_vm2, %v562_v26, -inf }
 0x1de   : > { %567 = vmax.xlane.f32.xlu0 %v566_v27 }
 0x251   : > { %v568_v30 = vpop.xlane.xlu0 %567 }
 0x252   : > { %v569_v31 = vmax.f32 %v564_v29, %v568_v30 }
 0x254   : > { %v570_v32 = vsub.f32 %v564_v29, %v569_v31  ;;  %621 = vst.msk [vmem:[#allocation3] sm:$0xff] %vm470_vm0, %v569_v31  ;;  %575 = vperm.xlu0 %944, %v569_v31  }
 0x256   : > { %v571_v33 = vmul.f32 1.442695, %v570_v32 }
 0x258   : > { %947 = vpow2.f32 %v571_v33 }
 0x25e   : > { %v948_v34 = vpop.eup %947 }
 0x25f   : > { %592 = vperm.xlu1 %945, %v948_v34   ;;  %v582_v45 = vmul.f32 %v948_v34, %v581_v44 }
 0x2c6   : > { %v576_v38 = vpop.permute.xlu0 %575 }
 0x2c7   : > { %v578_v39 = vsub.f32 %v562_v26, %v576_v38 }
 0x2c9   : > { %v579_v40 = vmul.f32 1.442695, %v578_v39 }
 0x2cb   : > { %949 = vpow2.f32 %v579_v40 }
 0x2d1   : > { %v950_v41 = vpop.eup %949  ;;  %v593_v43 = vpop.permute.xlu1 %592 }
 0x2d2   : > { %831 = vmatmul.msk.f32.vlgmr.msra.gmra.mxu3 %vm565_vm2, %v950_v41  ;;  %v583_v42 = vsel %vm565_vm2, %v950_v41, 0.0  ;;  %v595_v49 = vmul.f32 %v593_v43, %v589_v48 }
 0x2d3   : > { %584 = vadd.xlane.f32.xlu1 %v583_v42 }
 0x346   : > { %v585_v46 = vpop.xlane.xlu1 %584 }
 0x347   : > { %v586_v47 = vadd.f32 %v585_v46, %v582_v45 }
 0x349   : > { %588 = vst.msk [vmem:[#allocation4] sm:$0xff] %vm470_vm0, %v586_v47 }
 0x355   : > { %v616_v50 = vpop.f32.mrf.mxu3 }
 0x356   : > { %v619_v51 = vadd.f32 %v616_v50, %v595_v49 }
 0x358   : > { %620 = vst [vmem:[#allocation5] sm:$0xff] %v619_v51 }
 0x359 PF: > { %v625_v52 = vld [vmem:[#allocation4] sm:$0xff]  ;;  %v1225_v53 = vmov 0   ;;  %s833_s22 = sshll.u32 %s1204_s0, 3  ;;  %s662_s3 = sshll.u32 %s428_s30, 4  ;;  %s663_s3 = int_to_ptr.vmem [resolvable:$true] %s662_s3 }
 0x35a   : > { %951 = vset.pattern.permute.xlu0 %v1225_v53  ;;  %952 = vrcp.f32 %v625_v52  ;;  %v637_v56 = vand.u32 2147483648, %v625_v52  ;;  %vm631_vm3 = vweird.f32 %v625_v52  ;;  %v635_v58 = vand.u32 2147483647, %v625_v52  ;;  %s660_s19 = scalar_lea.hbm %s1492_s8, %s833_s22  ;;  %s649_s11 = scalar_lea.sflag [#allocation10], %s1387_s24 }
 0x35b   : > { %s664_s5 = sshll.u32 %s660_s19, 4  ;;  %s1136_s21 = scalar_lea.hbm %s1492_s8, 16  ;;  %s665_s5 = int_to_ptr.hbm [resolvable:$true] %s664_s5 }
 0x35c   : > { %v638_v60 = vor.u32 1.1754944e-38, %v637_v56  ;;  %vm636_vm6 = vcmp.eq.f32.partialorder %v635_v58, 8.507059e+37  ;;  %s1130_s12 = sshra.s32 %s665_s5, 4  ;;  %s1131_s12 = int_to_ptr.hbm [resolvable:$true] %s1130_s12 }
 0x35d   : > { %s1132_s18 = scalar_lea.hbm %s1131_s12, 8  ;;  %p1137_p12 = scmp.lt.s32.totalorder %s1131_s12, %s1492_s8 }
 0x35e   : > { %p1133_p9 = scmp.ne.s32.totalorder %s1131_s12, %s1132_s18  ;;  %p1138_p13 = scmp.lt.s32.totalorder %s1136_s21, %s1132_s18 }
 0x35f   : > { %v640_v0 = vld [vmem:[#allocation5] sm:$0xff] }
 0x360   : > { %v953_v54 = vpop.eup %952  ;;  %p1134_p10 = pnand %p1133_p9, %p1361_p4  ;;  %p1139_p0 = por %p1138_p13, %p1137_p12 }
 0x361   : > { %v627_v55 = vmul.f32 %v953_v54, %v625_v52  ;;  %vm632_vm4 = vweird.f32 %v953_v54 }
 0x362   : > { %vm633_vm5 = vmor %vm631_vm3, %vm632_vm4  ;;  %p1135_p11 = pneg %p1134_p10 }
 0x363   : > { %v628_v57 = vsub.f32 1.0, %v627_v55 }
 0x364   : > { %p1140_p2 = pnand %p1139_p0, %p1135_p11 }
 0x365   : > { %v629_v59 = vmul.f32 %v953_v54, %v628_v57 }
 0x367   : > { %v630_v61 = vadd.f32 %v953_v54, %v629_v59 }
 0x369   : > { %v634_v62 = vsel %vm633_vm5, %v953_v54, %v630_v61 }
 0x36a   : > { %v639_v63 = vsel %vm636_vm6, %v638_v60, %v634_v62 }
 0x36b   : > { %643 = vperm.xlu0 %951, %v639_v63  }
 0x3dd   : > { %v644_v1 = vpop.permute.xlu0 %643 }
 0x3de   : > { %v646_v2 = vmul.f32 %v644_v1, %v640_v0 }
 0x3e0   : > { %647 = vst [vmem:[%s428_s30] sm:$0xff] %v646_v2 }
 0x3e1   : > { %1143 = shalt.err (!%p1140_p2)
}
 0x3e2   : > { %852 = dma.vmem_to_hbm [thread:$0]  (%p1361_p4), %s663_s3, 128, %s665_s5, %s649_s11  }
 0x3e3 PF: > { %s676_s4 = sand.u32 1, %s1192_s9   ;;  %p872_p5 = pnand %p815_p6, %p1369_p7 }
 0x3e4   : > { %s677_s14 = scalar_lea.sflag [#allocation10], %s676_s4 }
 0x3e5   : > { %p873_p8 = pneg %p872_p5 }
 0x3e7   : > { %1187 = dma.done.wait (%p873_p8), %s677_s14, 128  }
 0x3e8   : > { %1189 = vsyncadd (%p873_p8), %s677_s14, 4294967168  ;;  %s36_s13 = sadd.s32 1, %s1212_s13   ;;  %s1515_s30 = sld [smem:[#allocation24_spill]] }
 0x3e9   : > { %p33_p3 = scmp.ge.s32.totalorder %s36_s13, 4   ;;  %s1516_s11 = sld [smem:[#allocation27_spill]] }
 0x3ea   : > { %s1517_s0 = sld [smem:[#allocation25_spill]]  ;;  %s1519_s9 = smov %s1196_s10 }
 0x3eb   : > { %s1518_s12 = sld [smem:[#allocation26_spill]]  ;;  %35 = sbr.rel (!%p33_p3) target bundleno = 17 (0x11), region = 133 }
 0x3ee   : > { %s1520_s10 = smov %s1515_s30 }
 0x3f0   :  { %683 = vsyncpa [#allocation9], 1 }
 0x3f1   :  { %685 = vsyncpa [#allocation9 + $0x1], 1 }
 0x3f2   :  { %686 = vsyncpa [#allocation12], 1 }
 0x3f3   :  { %688 = vsyncpa [#allocation12 + $0x1], 1 }
 0x3f4   :  { %689 = vsyncpa [#allocation15], 1 }
 0x3f5   :  { %690 = vsyncpa [#allocation10], 1 }
 0x3f6   :  { %692 = vsyncpa [#allocation10 + $0x1], 1 }

</bundles_post_ra>
